<compile_context>
chip_gen: v7x
topology: tpu7x:2x2x1
jax: 0.10.0
libtpu: 0.0.40
codegen_flags: <defaults>
</compile_context>

<pallas_src>
import jax
import jax.numpy as jnp
from jax.experimental import pallas as pl
from jax.experimental.pallas import tpu as pltpu

H1 = 32   # hidden sizes fixed by the module spec
H2 = 16


def _round_up(x, m):
    return ((x + m - 1) // m) * m


def _blob_geometry(in_dim, latent_dim):
    """Rows / bias-column / cols of the packed parameter blob (all aligned)."""
    dout = 2 * latent_dim
    rows = _round_up(max(H1, H2, dout), 8)
    bias_col = _round_up(max(in_dim, H1, H2), 128)   # lane-aligned bias column
    cols = bias_col + 128                            # last dim multiple of 128
    return rows, bias_col, cols


def _make_encoder_kernel(in_dim, latent_dim, bias_col):
    dout = 2 * latent_dim

    def kernel(xcT_ref, p_ref, out_ref):
        # xcT_ref: (in_dim, TILE_B) in the compute dtype (bf16 by default),
        # batch on lanes.  p_ref: (3, rows, cols) f32, VMEM-resident.
        xcT = xcT_ref[...]

        p0 = p_ref[0]                                   # per-layer slabs
        p1 = p_ref[1]
        p2 = p_ref[2]

        # Layer 1: single K = in_dim matmul straight on the (bf16) input
        # stream, f32 accumulation, bias + ReLU in f32.
        w1 = p0[:H1, :in_dim].astype(xcT.dtype)
        b1 = p0[:H1, bias_col:bias_col + 1]
        a1 = jnp.maximum(
            jnp.dot(w1, xcT, preferred_element_type=jnp.float32) + b1, 0.0)

        # Layer 2 (f32 activations; weights are tiny and VMEM-resident).
        w2 = p1[:H2, :H1]
        b2 = p1[:H2, bias_col:bias_col + 1]
        a2 = jnp.maximum(
            jnp.dot(w2, a1, preferred_element_type=jnp.float32) + b2, 0.0)

        # Layer 3: merged (mu, log_var) rows, written lane-dense in one shot.
        w3 = p2[:dout, :H2]
        b3 = p2[:dout, bias_col:bias_col + 1]
        out_ref[...] = (
            jnp.dot(w3, a2, preferred_element_type=jnp.float32) + b3
        ).astype(out_ref.dtype)

    return kernel


def init_params(key, output_dim, conditional_dim, latent_dim):
    """PyTorch-style init; weights stored PyTorch-native as (out, in)."""
    in_dim = output_dim + conditional_dim
    dims = [(in_dim, H1), (H1, H2), (H2, 2 * latent_dim)]
    params = []
    for din, dout in dims:
        key, kw, kb = jax.random.split(key, 3)
        bound = 1.0 / jnp.sqrt(din)
        w = jax.random.uniform(kw, (dout, din), jnp.float32, -bound, bound)
        b = jax.random.uniform(kb, (dout,), jnp.float32, -bound, bound)
        params += [w, b]
    return tuple(params)


def pack_params(params, in_dim, latent_dim):
    """Pack the 3 layers' (out, in) weights + biases into one aligned blob.

    Layer l's weight sits at P[l, :out_l, :in_l] (sublane 0 / lane 0) and its
    bias in the lane-aligned column P[l, :out_l, bias_col]; the rest is zero
    padding, so every in-kernel slice starts at an aligned offset (no
    lane-shifted VMEM copies).  Done once at setup time.
    """
    w1, b1, w2, b2, w3, b3 = params
    dout = 2 * latent_dim
    rows, bias_col, cols = _blob_geometry(in_dim, latent_dim)
    p = jnp.zeros((3, rows, cols), jnp.float32)
    p = p.at[0, :H1, :in_dim].set(w1).at[0, :H1, bias_col].set(b1)
    p = p.at[1, :H2, :H1].set(w2).at[1, :H2, bias_col].set(b2)
    p = p.at[2, :dout, :H2].set(w3).at[2, :dout, bias_col].set(b3)
    return p


def encoder_forward(x, c, packed_params, latent_dim, *,
                    tile_b=32768, compute_dtype=jnp.bfloat16):
    """x: (B, output_dim), c: (B, conditional_dim) -> (mu, log_var), each (B, latent)."""
    B, dx = x.shape
    _, dc = c.shape
    in_dim = dx + dc
    dout = 2 * latent_dim
    out_dtype = x.dtype
    cd = out_dtype if compute_dtype is None else compute_dtype
    _, bias_col, _ = _blob_geometry(in_dim, latent_dim)

    # One fused relayout pass in XLA: concat + cast + transpose -> (in_dim, B)
    # with batch on the minor (lane) axis.  This is the only extra HBM pass for
    # the inputs; it also removes the in-kernel concat and halves layer-1 work.
    xcT = jnp.concatenate([x, c], axis=-1).astype(cd).T

    # Batch tiling: lane-dense (multiple of 128), large tiles so the ~0.35 us
    # per-grid-step overhead is negligible, and >= 2 tiles once the batch is
    # big enough so CORE_PARALLEL can use both v7x TensorCores.
    tile_b = max(128, _round_up(tile_b, 128))
    b128 = _round_up(max(B, 1), 128)
    if b128 <= 256:
        tile = b128
    else:
        n_split = max(2, pl.cdiv(b128, tile_b))
        tile = _round_up(pl.cdiv(b128, n_split), 128)
    b_pad = pl.cdiv(B, tile) * tile
    if b_pad != B:
        xcT = jnp.pad(xcT, ((0, 0), (0, b_pad - B)))
    n_tiles = b_pad // tile

    kernel = _make_encoder_kernel(in_dim, latent_dim, bias_col)

    def run(dim_semantics):
        return pl.pallas_call(
            kernel,
            out_shape=jax.ShapeDtypeStruct((dout, b_pad), out_dtype),
            grid=(n_tiles,),
            in_specs=[
                pl.BlockSpec((in_dim, tile), lambda i: (0, i)),
                # Same block every grid step -> params stay resident in VMEM.
                pl.BlockSpec(packed_params.shape, lambda i: (0, 0, 0)),
            ],
            out_specs=pl.BlockSpec((dout, tile), lambda i: (0, i)),
            compiler_params=pltpu.CompilerParams(
                dimension_semantics=dim_semantics,
                # 32 MiB: no-op on v6e/v7x defaults, lifts v5e's 16 MiB default
                # so the 32768-row double-buffered tile fits.
                vmem_limit_bytes=32 * 1024 * 1024,
            ),
        )(xcT, packed_params)

    try:
        # v7x: actually shard batch tiles across both TensorCores.
        outT = run((pltpu.CORE_PARALLEL,))
    except Exception:
        outT = run(("parallel",))

    # Single wrapper-side relayout of the (small) merged output, then split.
    out = outT[:, :B].T
    return out[:, :latent_dim], out[:, latent_dim:]


def encoder_ref(x, c, params, latent_dim):
    """Pure-JAX reference (PyTorch Linear semantics: x @ W.T + b)."""
    w1, b1, w2, b2, w3, b3 = params
    h = jnp.concatenate([x, c], axis=-1)
    h = jnp.maximum(h @ w1.T + b1, 0.0)
    h = jnp.maximum(h @ w2.T + b2, 0.0)
    h = h @ w3.T + b3
    return h[:, :latent_dim], h[:, latent_dim:]


if __name__ == "__main__":
    batch = 8
    output_dim = 4
    conditional_dim = 4
    latent_dim = 2

    key = jax.random.PRNGKey(0)
    kx, kc, kp = jax.random.split(key, 3)
    x = jax.random.normal(kx, (batch, output_dim), jnp.float32)
    c = jax.random.normal(kc, (batch, conditional_dim), jnp.float32)

    params = init_params(kp, output_dim, conditional_dim, latent_dim)
    packed = pack_params(params, output_dim + conditional_dim, latent_dim)

    mu_ref, lv_ref = encoder_ref(x, c, params, latent_dim)

    # Exactness path: f32 input stream.
    mu, log_var = encoder_forward(x, c, packed, latent_dim,
                                  compute_dtype=jnp.float32)
    jax.block_until_ready((mu, log_var))
    assert mu.shape == (batch, latent_dim)
    assert log_var.shape == (batch, latent_dim)
    assert jnp.allclose(mu, mu_ref, atol=1e-3, rtol=1e-3)
    assert jnp.allclose(log_var, lv_ref, atol=1e-3, rtol=1e-3)

    # Default fast path: bf16 input stream, f32 accumulation (per perf review).
    mu_b, lv_b = encoder_forward(x, c, packed, latent_dim)
    jax.block_until_ready((mu_b, lv_b))
    assert mu_b.shape == (batch, latent_dim)
    assert lv_b.shape == (batch, latent_dim)
    assert jnp.allclose(mu_b, mu_ref, atol=5e-2, rtol=5e-2)
    assert jnp.allclose(lv_b, lv_ref, atol=5e-2, rtol=5e-2)

    print("KERNEL_OK")
</pallas_src>

<mosaic_0001>
module attributes {stable_mosaic.version = 11 : i64} {
  func.func @kernel(%arg0: i32, %arg1: memref<8x128xf32, #tpu.memory_space<vmem>>, %arg2: memref<3x32x256xf32, #tpu.memory_space<vmem>>, %arg3: memref<4x128xf32, #tpu.memory_space<vmem>>) attributes {dimension_semantics = [#tpu.dimension_semantics<core_parallel>], iteration_bounds = array<i64: 1>, scalar_prefetch = 0 : i64, scratch_operands = 0 : i64, tpu.core_type = #tpu.core_type<tc>, window_params = [{transform_indices = @transform_0, window_bounds = array<i64: 8, 128>}, {pipeline_mode = #tpu.pipeline_mode<synchronous>, transform_indices = @transform_1, window_bounds = array<i64: 3, 32, 256>}, {transform_indices = @transform_2, window_bounds = array<i64: 4, 128>}]} {
    %c0 = arith.constant 0 : index
    %c0_0 = arith.constant 0 : index
    %0 = vector.load %arg1[%c0, %c0_0] : memref<8x128xf32, #tpu.memory_space<vmem>>, vector<8x128xf32>
    %c0_1 = arith.constant 0 : index
    %c0_2 = arith.constant 0 : index
    %c0_3 = arith.constant 0 : index
    %1 = vector.load %arg2[%c0_1, %c0_2, %c0_3] : memref<3x32x256xf32, #tpu.memory_space<vmem>>, vector<1x32x256xf32>
    %2 = vector.shape_cast %1 : vector<1x32x256xf32> to vector<32x256xf32>
    %c1 = arith.constant 1 : index
    %c0_4 = arith.constant 0 : index
    %c0_5 = arith.constant 0 : index
    %3 = vector.load %arg2[%c1, %c0_4, %c0_5] : memref<3x32x256xf32, #tpu.memory_space<vmem>>, vector<1x32x256xf32>
    %4 = vector.shape_cast %3 : vector<1x32x256xf32> to vector<32x256xf32>
    %c2 = arith.constant 2 : index
    %c0_6 = arith.constant 0 : index
    %c0_7 = arith.constant 0 : index
    %5 = vector.load %arg2[%c2, %c0_6, %c0_7] : memref<3x32x256xf32, #tpu.memory_space<vmem>>, vector<1x32x256xf32>
    %6 = vector.shape_cast %5 : vector<1x32x256xf32> to vector<32x256xf32>
    %7 = vector.extract_strided_slice %2 {offsets = [0, 0], sizes = [32, 8], strides = [1, 1]} : vector<32x256xf32> to vector<32x8xf32>
    %8 = vector.extract_strided_slice %2 {offsets = [0, 128], sizes = [32, 1], strides = [1, 1]} : vector<32x256xf32> to vector<32x1xf32>
    %cst = arith.constant dense<0.000000e+00> : vector<32x128xf32>
    %9 = tpu.matmul %7, %0, %cst {dimension_numbers = #tpu.dot_dimension_numbers<[1], [0], [0], [1], [0, 0, 1, 1], [], []>} : vector<32x8xf32>, vector<8x128xf32>, vector<32x128xf32> -> vector<32x128xf32>
    %10 = vector.broadcast %8 : vector<32x1xf32> to vector<32x128xf32>
    %11 = arith.addf %9, %10 : vector<32x128xf32>
    %cst_8 = arith.constant 0.000000e+00 : f32
    %12 = vector.broadcast %cst_8 : f32 to vector<32x128xf32>
    %13 = arith.maximumf %11, %12 : vector<32x128xf32>
    %14 = vector.extract_strided_slice %4 {offsets = [0, 0], sizes = [16, 32], strides = [1, 1]} : vector<32x256xf32> to vector<16x32xf32>
    %15 = vector.extract_strided_slice %4 {offsets = [0, 128], sizes = [16, 1], strides = [1, 1]} : vector<32x256xf32> to vector<16x1xf32>
    %cst_9 = arith.constant dense<0.000000e+00> : vector<16x128xf32>
    %16 = tpu.matmul %14, %13, %cst_9 {dimension_numbers = #tpu.dot_dimension_numbers<[1], [0], [0], [1], [0, 0, 1, 1], [], []>} : vector<16x32xf32>, vector<32x128xf32>, vector<16x128xf32> -> vector<16x128xf32>
    %17 = vector.broadcast %15 : vector<16x1xf32> to vector<16x128xf32>
    %18 = arith.addf %16, %17 : vector<16x128xf32>
    %cst_10 = arith.constant 0.000000e+00 : f32
    %19 = vector.broadcast %cst_10 : f32 to vector<16x128xf32>
    %20 = arith.maximumf %18, %19 : vector<16x128xf32>
    %21 = vector.extract_strided_slice %6 {offsets = [0, 0], sizes = [4, 16], strides = [1, 1]} : vector<32x256xf32> to vector<4x16xf32>
    %22 = vector.extract_strided_slice %6 {offsets = [0, 128], sizes = [4, 1], strides = [1, 1]} : vector<32x256xf32> to vector<4x1xf32>
    %cst_11 = arith.constant dense<0.000000e+00> : vector<4x128xf32>
    %23 = tpu.matmul %21, %20, %cst_11 {dimension_numbers = #tpu.dot_dimension_numbers<[1], [0], [0], [1], [0, 0, 1, 1], [], []>} : vector<4x16xf32>, vector<16x128xf32>, vector<4x128xf32> -> vector<4x128xf32>
    %24 = vector.broadcast %22 : vector<4x1xf32> to vector<4x128xf32>
    %25 = arith.addf %23, %24 : vector<4x128xf32>
    %c0_12 = arith.constant 0 : index
    %c0_13 = arith.constant 0 : index
    %26 = vector.load %arg3[%c0_12, %c0_13] : memref<4x128xf32, #tpu.memory_space<vmem>>, vector<4x128xf32>
    tpu.vector_store %arg3[%c0_12, %c0_13], %25 {strides = array<i32>} : memref<4x128xf32, #tpu.memory_space<vmem>>, vector<4x128xf32>,
    return
  }
  func.func @transform_0(%arg0: i32) -> (i32, i32) {
    %c0_i32 = arith.constant 0 : i32
    %c0_i32_0 = arith.constant 0 : i32
    return %c0_i32, %arg0 : i32, i32
  }
  func.func @transform_1(%arg0: i32) -> (i32, i32, i32) {
    %c0_i32 = arith.constant 0 : i32
    %c0_i32_0 = arith.constant 0 : i32
    %c0_i32_1 = arith.constant 0 : i32
    %c0_i32_2 = arith.constant 0 : i32
    return %c0_i32, %c0_i32_0, %c0_i32_1 : i32, i32, i32
  }
  func.func @transform_2(%arg0: i32) -> (i32, i32) {
    %c0_i32 = arith.constant 0 : i32
    %c0_i32_0 = arith.constant 0 : i32
    return %c0_i32, %arg0 : i32, i32
  }
}

module attributes {stable_mosaic.version = 11 : i64} {
  func.func @kernel(%arg0: i32, %arg1: memref<8x128xf32, #tpu.memory_space<vmem>>, %arg2: memref<3x32x256xf32, #tpu.memory_space<vmem>>, %arg3: memref<4x128xf32, #tpu.memory_space<vmem>>) attributes {dimension_semantics = [#tpu.dimension_semantics<parallel>], iteration_bounds = array<i64: 1>, scalar_prefetch = 0 : i64, scratch_operands = 0 : i64, tpu.core_type = #tpu.core_type<tc>, window_params = [{transform_indices = @transform_0, window_bounds = array<i64: 8, 128>}, {pipeline_mode = #tpu.pipeline_mode<synchronous>, transform_indices = @transform_1, window_bounds = array<i64: 3, 32, 256>}, {transform_indices = @transform_2, window_bounds = array<i64: 4, 128>}]} {
    %c0 = arith.constant 0 : index
    %c0_0 = arith.constant 0 : index
    %0 = vector.load %arg1[%c0, %c0_0] : memref<8x128xf32, #tpu.memory_space<vmem>>, vector<8x128xf32>
    %c0_1 = arith.constant 0 : index
    %c0_2 = arith.constant 0 : index
    %c0_3 = arith.constant 0 : index
    %1 = vector.load %arg2[%c0_1, %c0_2, %c0_3] : memref<3x32x256xf32, #tpu.memory_space<vmem>>, vector<1x32x256xf32>
    %2 = vector.shape_cast %1 : vector<1x32x256xf32> to vector<32x256xf32>
    %c1 = arith.constant 1 : index
    %c0_4 = arith.constant 0 : index
    %c0_5 = arith.constant 0 : index
    %3 = vector.load %arg2[%c1, %c0_4, %c0_5] : memref<3x32x256xf32, #tpu.memory_space<vmem>>, vector<1x32x256xf32>
    %4 = vector.shape_cast %3 : vector<1x32x256xf32> to vector<32x256xf32>
    %c2 = arith.constant 2 : index
    %c0_6 = arith.constant 0 : index
    %c0_7 = arith.constant 0 : index
    %5 = vector.load %arg2[%c2, %c0_6, %c0_7] : memref<3x32x256xf32, #tpu.memory_space<vmem>>, vector<1x32x256xf32>
    %6 = vector.shape_cast %5 : vector<1x32x256xf32> to vector<32x256xf32>
    %7 = vector.extract_strided_slice %2 {offsets = [0, 0], sizes = [32, 8], strides = [1, 1]} : vector<32x256xf32> to vector<32x8xf32>
    %8 = vector.extract_strided_slice %2 {offsets = [0, 128], sizes = [32, 1], strides = [1, 1]} : vector<32x256xf32> to vector<32x1xf32>
    %cst = arith.constant dense<0.000000e+00> : vector<32x128xf32>
    %9 = tpu.matmul %7, %0, %cst {dimension_numbers = #tpu.dot_dimension_numbers<[1], [0], [0], [1], [0, 0, 1, 1], [], []>} : vector<32x8xf32>, vector<8x128xf32>, vector<32x128xf32> -> vector<32x128xf32>
    %10 = vector.broadcast %8 : vector<32x1xf32> to vector<32x128xf32>
    %11 = arith.addf %9, %10 : vector<32x128xf32>
    %cst_8 = arith.constant 0.000000e+00 : f32
    %12 = vector.broadcast %cst_8 : f32 to vector<32x128xf32>
    %13 = arith.maximumf %11, %12 : vector<32x128xf32>
    %14 = vector.extract_strided_slice %4 {offsets = [0, 0], sizes = [16, 32], strides = [1, 1]} : vector<32x256xf32> to vector<16x32xf32>
    %15 = vector.extract_strided_slice %4 {offsets = [0, 128], sizes = [16, 1], strides = [1, 1]} : vector<32x256xf32> to vector<16x1xf32>
    %cst_9 = arith.constant dense<0.000000e+00> : vector<16x128xf32>
    %16 = tpu.matmul %14, %13, %cst_9 {dimension_numbers = #tpu.dot_dimension_numbers<[1], [0], [0], [1], [0, 0, 1, 1], [], []>} : vector<16x32xf32>, vector<32x128xf32>, vector<16x128xf32> -> vector<16x128xf32>
    %17 = vector.broadcast %15 : vector<16x1xf32> to vector<16x128xf32>
    %18 = arith.addf %16, %17 : vector<16x128xf32>
    %cst_10 = arith.constant 0.000000e+00 : f32
    %19 = vector.broadcast %cst_10 : f32 to vector<16x128xf32>
    %20 = arith.maximumf %18, %19 : vector<16x128xf32>
    %21 = vector.extract_strided_slice %6 {offsets = [0, 0], sizes = [4, 16], strides = [1, 1]} : vector<32x256xf32> to vector<4x16xf32>
    %22 = vector.extract_strided_slice %6 {offsets = [0, 128], sizes = [4, 1], strides = [1, 1]} : vector<32x256xf32> to vector<4x1xf32>
    %cst_11 = arith.constant dense<0.000000e+00> : vector<4x128xf32>
    %23 = tpu.matmul %21, %20, %cst_11 {dimension_numbers = #tpu.dot_dimension_numbers<[1], [0], [0], [1], [0, 0, 1, 1], [], []>} : vector<4x16xf32>, vector<16x128xf32>, vector<4x128xf32> -> vector<4x128xf32>
    %24 = vector.broadcast %22 : vector<4x1xf32> to vector<4x128xf32>
    %25 = arith.addf %23, %24 : vector<4x128xf32>
    %c0_12 = arith.constant 0 : index
    %c0_13 = arith.constant 0 : index
    %26 = vector.load %arg3[%c0_12, %c0_13] : memref<4x128xf32, #tpu.memory_space<vmem>>, vector<4x128xf32>
    tpu.vector_store %arg3[%c0_12, %c0_13], %25 {strides = array<i32>} : memref<4x128xf32, #tpu.memory_space<vmem>>, vector<4x128xf32>,
    return
  }
  func.func @transform_0(%arg0: i32) -> (i32, i32) {
    %c0_i32 = arith.constant 0 : i32
    %c0_i32_0 = arith.constant 0 : i32
    return %c0_i32, %arg0 : i32, i32
  }
  func.func @transform_1(%arg0: i32) -> (i32, i32, i32) {
    %c0_i32 = arith.constant 0 : i32
    %c0_i32_0 = arith.constant 0 : i32
    %c0_i32_1 = arith.constant 0 : i32
    %c0_i32_2 = arith.constant 0 : i32
    return %c0_i32, %c0_i32_0, %c0_i32_1 : i32, i32, i32
  }
  func.func @transform_2(%arg0: i32) -> (i32, i32) {
    %c0_i32 = arith.constant 0 : i32
    %c0_i32_0 = arith.constant 0 : i32
    return %c0_i32, %arg0 : i32, i32
  }
}

</mosaic_0001>

<bundles_post_ra>
// kernel: tpu_custom_call.1
= control target key start
LH: loop header
LB: loop body
LE: loop exit
PB: predicated region body
PF: predicated region fallthrough
CT: control target
= control target key end

     0   :  { %s546_s9 = sld [smem:[#allocation0]]   ;;  %s586_s0 = inlined_call_operand.hbm [shape: f32[8,128], index: 0, kind: input, shape index: {}]   ;;  %s587_s1 = inlined_call_operand.hbm [shape: f32[3,32,256], index: 1, kind: input, shape index: {}]   ;;  %s588_s2 = inlined_call_operand.hbm [shape: f32[4,128], index: 2, kind: output, shape index: {}]  }
   0x1   :  { %7 = vsyncpa [#allocation3], 0 }
   0x2   :  { %8 = vsyncpa [#allocation6], 0 }
   0x3   :  { %9 = vsyncpa [#allocation4], 0  ;;  %s522_s14 = smov [#allocation2]   ;;  %s448_s19 = scalar_lea.hbm %s586_s0, 128 }
   0x4   :  { %s18_s15 = sshll.u32 %s522_s14, 4  ;;  %s19_s15 = int_to_ptr.vmem [resolvable:$true] %s18_s15 }
   0x6   :  { %s375_s10 = sshll.u32 %s546_s9, 7 }
   0x7   :  { %s16_s13 = scalar_lea.hbm %s586_s0, %s375_s10 }
   0x8   :  { %s446_s16 = scalar_lea.hbm %s16_s13, 128  ;;  %p449_p1 = scmp.lt.u32.totalorder %s16_s13, %s586_s0 }
   0x9   :  { %p447_p0 = scmp.ne.s32.totalorder %s16_s13, %s446_s16  ;;  %p450_p2 = scmp.lt.u32.totalorder %s448_s19, %s446_s16 }
   0xa   :  { %p452_p4 = scmp.lt.u32.totalorder %s446_s16, %s16_s13 }
   0xb   :  { %p451_p3 = por %p450_p2, %p449_p1 }
   0xd   :  { %p453_p5 = por %p452_p4, %p451_p3 }
   0xf   :  { %p454_p6 = pnand %p453_p5, %p447_p0 }
  0x11   :  { %457 = shalt.err (!%p454_p6)
}
  0x12   :  { %s458_s22 = scalar_lea.vmem %s19_s15, 128  ;;  %p463_p8 = scmp.lt.s32.totalorder %s19_s15, %s19_s15 }
  0x13   :  { %p459_p7 = scmp.ne.s32.totalorder %s19_s15, %s458_s22  ;;  %p464_p9 = scmp.lt.s32.totalorder %s458_s22, %s458_s22 }
  0x15   :  { %p465_p10 = por %p464_p9, %p463_p8 }
  0x17   :  { %p466_p11 = pnand %p465_p10, %p459_p7 }
  0x19   :  { %469 = shalt.err (!%p466_p11)
}
  0x1a   :  { %21 = dma.hbm_to_vmem [thread:$0]  %s16_s13, 128, %s19_s15, [#allocation3]  }
  0x1b   :  { %s523_s23 = smov [#allocation5]   ;;  %s470_s0 = scalar_lea.hbm %s587_s1, 3072 }
  0x1c   :  { %s27_s24 = sshll.u32 %s523_s23, 4  ;;  %p471_p12 = scmp.ne.s32.totalorder %s587_s1, %s470_s0  ;;  %s28_s24 = int_to_ptr.vmem [resolvable:$true] %s27_s24 }
  0x1d   :  { %p474_p13 = scmp.lt.u32.totalorder %s470_s0, %s587_s1 }
  0x1f   :  { %p476_p0 = pnand %p474_p13, %p471_p12 }
  0x21   :  { %479 = shalt.err (!%p476_p0)
}
  0x22   :  { %s480_s3 = scalar_lea.vmem %s28_s24, 3072  ;;  %p485_p2 = scmp.lt.s32.totalorder %s28_s24, %s28_s24 }
  0x23   :  { %p481_p1 = scmp.ne.s32.totalorder %s28_s24, %s480_s3  ;;  %p486_p3 = scmp.lt.s32.totalorder %s480_s3, %s480_s3 }
  0x25   :  { %p487_p4 = por %p486_p3, %p485_p2 }
  0x27   :  { %p488_p5 = pnand %p487_p4, %p481_p1 }
  0x29   :  { %491 = shalt.err (!%p488_p5)
}
  0x2a   :  { %s524_s4 = smov 256   ;;  %s525_s5 = smov 16  }
  0x2b   :  { %33 = dma.hbm_to_vmem [thread:$0]  %s587_s1, 3072, %s28_s24, [#allocation6], %s524_s4, %s524_s4, %s525_s5  }
  0x2c   :  { %516 = dma.done.wait [#allocation3], 128  }
  0x2d   :  { %517 = vsyncadd [#allocation3], 4294967168 }
  0x2e   :  { %518 = dma.done.wait [#allocation6], 3072  }
  0x2f   :  { %519 = vsyncadd [#allocation6], 4294964224  ;;  %v526_v0 = vmov 0   ;;  %vm77_vm0 = vcmask 64512   ;;  %v40_v1 = vld [vmem:[#allocation2] sm:$0xff]  ;;  %v41_v2 = vld [vmem:[#allocation5] sm:$0xff] }
  0x30   :  { %444 = vset.pattern.permute.xlu0 %v526_v0  ;;  %445 = vset.pattern.permute.xlu1 %v526_v0  ;;  %v43_v3 = vld [vmem:[#allocation5 + $0x10] sm:$0xff]  ;;  %v45_v4 = vld [vmem:[#allocation5 + $0x20] sm:$0xff]  ;;  %v42_v5 = vld [vmem:[#allocation5 + $0x8] sm:$0xff]  ;;  %vm189_vm1 = vcmask 261120   ;;  %v527_v33 = vmov 0.0|0.0   ;;  %vm528_vm2 = vmmov 0  }
  0x31   :  { %398 = vmatprep.subr.mxu0 %v40_v1  ;;  %400 = vmatprep.mubr.msk.f32.mxu0 %vm77_vm0, %v41_v2  ;;  %v46_v6 = vld [vmem:[#allocation5 + $0x28] sm:$0xff]  ;;  %v44_v7 = vld [vmem:[#allocation5 + $0x18] sm:$0xff]  ;;  %v47_v8 = vld [vmem:[#allocation5 + $0x30] sm:$0xff]  ;;  %v529_v34 = vmov 0.0   ;;  %vm278_vm3 = vcmask 130048   ;;  %s383_s1 = sshll.u32 %s546_s9, 6 }
  0x32   :  { %399 = vmatpush3.msra.mxu0 %v40_v1  ;;  %59 = vperm.xlu0 %444, %v42_v5   ;;  %v48_v9 = vld [vmem:[#allocation5 + $0x38] sm:$0xff]  ;;  %v51_v10 = vld [vmem:[#allocation5 + $0x48] sm:$0xff]  ;;  %v50_v13 = vld [vmem:[#allocation5 + $0x40] sm:$0xff]  ;;  %s530_s8 = smov [#allocation7]   ;;  %s359_s13 = scalar_lea.hbm %s588_s2, %s383_s1 }
  0x33   :  { %401 = vmatmul.mubr.msk.f32.vlgmr.msra.gmra.mrb[0].mxu0 %vm77_vm0, %v43_v3  ;;  %69 = vperm.xlu1 %445, %v46_v6   ;;  %v53_v11 = vld [vmem:[#allocation5 + $0x58] sm:$0xff]  ;;  %v56_v12 = vld [vmem:[#allocation5 + $0x88] sm:$0xff]  ;;  %v52_v32 = vld [vmem:[#allocation5 + $0x50] sm:$0xff]  ;;  %s361_s10 = sshll.u32 %s530_s8, 4  ;;  %s362_s10 = int_to_ptr.vmem [resolvable:$true] %s361_s10 }
  0x34   :  { %403 = vmatprep.mubr.msk.f32.mxu0 %vm77_vm0, %v45_v4  ;;  %414 = vmatprep.mubr.msk.f32.mxu1 %vm189_vm1, %v50_v13  ;;  %v55_v44 = vld [vmem:[#allocation5 + $0x80] sm:$0xff]  ;;  %s492_s14 = scalar_lea.vmem %s362_s10, 64  ;;  %p497_p7 = scmp.lt.s32.totalorder %s362_s10, %s362_s10 }
  0x35   :  { %432 = vmatprep.subr.bf16.mxu0 %v527_v33  ;;  %p493_p6 = scmp.ne.s32.totalorder %s362_s10, %s492_s14  ;;  %p498_p8 = scmp.lt.s32.totalorder %s492_s14, %s492_s14 }
  0x36   :  { %64 = vperm.xlu0 %444, %v44_v7  }
  0x37   :  { %404 = vmatmul.mubr.msk.f32.gmra.mrb[2].mxu0 %vm77_vm0, %v47_v8  ;;  %74 = vperm.xlu1 %445, %v48_v9   ;;  %p499_p9 = por %p498_p8, %p497_p7 }
  0x38   :  { %421 = vmatprep.mubr.msk.f32.mxu0 %vm528_vm2, %v529_v34 }
  0x39   :  { %p500_p10 = pnand %p499_p9, %p493_p6 }
  0x3a   :  { %181 = vperm.xlu0 %444, %v51_v10  }
  0x3b   :  { %186 = vperm.xlu1 %445, %v53_v11  }
  0x3e   :  { %275 = vperm.xlu0 %444, %v56_v12  }
  0xb1   :  { %v60_v14 = vpop.permute.xlu0 %59 }
  0xb2   :  { %v70_v15 = vpop.permute.xlu1 %69 }
  0xb5   :  { %v65_v16 = vpop.permute.xlu0 %64 }
  0xb6   :  { %v75_v22 = vpop.permute.xlu1 %74 }
  0xb9   :  { %v182_v37 = vpop.permute.xlu0 %181 }
  0xba   :  { %v187_v35 = vpop.permute.xlu1 %186 }
  0xbd   :  { %v276_v45 = vpop.permute.xlu0 %275 }
 0x106   :  { %v402_v17 = vpop.f32.mrb[0].mxu0 }
 0x107   :  { %v162_v18 = vadd.f32 %v402_v17, %v65_v16  ;;  %v156_v19 = vpop.f32.mrb[1].mxu0 }
 0x108   :  { %v157_v20 = vadd.f32 %v156_v19, %v60_v14 }
 0x109   :  { %v176_v21 = vmax.f32 %v162_v18, 0.0 }
 0x10a   :  { %v175_v23 = vmax.f32 %v157_v20, 0.0  ;;  %v405_v24 = vpop.f32.mrb[2].mxu0 }
 0x10b   :  { %v172_v25 = vadd.f32 %v405_v24, %v75_v22  ;;  %v166_v26 = vpop.f32.mrb[3].mxu0 }
 0x10c   :  { %v167_v27 = vadd.f32 %v166_v26, %v70_v15  ;;  %v424_v28 = vpack.c.bf16 %v176_v21, %v175_v23 }
 0x10d   :  { %v178_v29 = vmax.f32 %v172_v25, 0.0 }
 0x10e   :  { %v177_v30 = vmax.f32 %v167_v27, 0.0  ;;  %425 = vmatprep.subr.bf16.mxu1 %v424_v28 }
 0x10f   :  { %427 = vmatpush3.bf16.msra.mxu1 %v424_v28 }
 0x110   :  { %v428_v31 = vpack.c.bf16 %v178_v29, %v177_v30 }
 0x112   :  { %429 = vmatprep.subr.bf16.mxu1 %v428_v31 }
 0x113   :  { %431 = vmatpush3.bf16.msra.mxu1 %v428_v31 }
 0x116   :  { %415 = vmatmul.mubr.msk.f32.vlgmr.msra.gmra.mrb[0].mxu1 %vm189_vm1, %v52_v32 }
 0x1e9   :  { %v416_v36 = vpop.f32.mrb[0].mxu1 }
 0x1ea   :  { %v268_v38 = vadd.f32 %v416_v36, %v187_v35  ;;  %v262_v39 = vpop.f32.mrb[1].mxu1 }
 0x1eb   :  { %v263_v40 = vadd.f32 %v262_v39, %v182_v37 }
 0x1ec   :  { %v272_v41 = vmax.f32 %v268_v38, 0.0 }
 0x1ed   :  { %v271_v42 = vmax.f32 %v263_v40, 0.0 }
 0x1ef   :  { %v433_v43 = vpack.c.bf16 %v272_v41, %v271_v42 }
 0x1f1   :  { %434 = vmatpush3.bf16.msra.mxu0 %v433_v43 }
 0x1f4   :  { %422 = vmatmul.mubr.msk.f32.vlgmr.msra.gmra.mrb[4].mxu0 %vm278_vm3, %v55_v44 }
 0x2c7   :  { %v348_v46 = vpop.f32.mrb[4].mxu0 }
 0x2c8   :  { %v349_v47 = vadd.f32 %v348_v46, %v276_v45  ;;  %v423_v48 = vpop.f32.mrb[5].mxu0 }
 0x2ca   :  { %352 = vst [vmem:[#allocation7] sm:$0xf] %v349_v47 }
 0x2cb   :  { %503 = shalt.err (!%p500_p10)
}
 0x2cc   :  { %s504_s9 = scalar_lea.hbm %s359_s13, 64  ;;  %s506_s17 = scalar_lea.hbm %s588_s2, 64 }
 0x2cd   :  { %p505_p11 = scmp.ne.s32.totalorder %s359_s13, %s504_s9  ;;  %p507_p12 = scmp.lt.u32.totalorder %s359_s13, %s588_s2 }
 0x2ce   :  { %p508_p13 = scmp.lt.u32.totalorder %s506_s17, %s504_s9  ;;  %p510_p1 = scmp.lt.u32.totalorder %s504_s9, %s359_s13 }
 0x2d0   :  { %p509_p0 = por %p508_p13, %p507_p12 }
 0x2d2   :  { %p511_p2 = por %p510_p1, %p509_p0 }
 0x2d4   :  { %p512_p3 = pnand %p511_p2, %p505_p11 }
 0x2d6   :  { %515 = shalt.err (!%p512_p3)
}
 0x2d7   :  { %364 = dma.vmem_to_hbm [thread:$0]  %s362_s10, 64, %s359_s13, [#allocation4]  }
 0x2d8   :  { %520 = dma.done.wait [#allocation4], 64  }
 0x2d9   :  { %521 = vsyncadd [#allocation4], 4294967232 }
 0x2da   :  { %368 = vsyncpa [#allocation3], 1 }
 0x2db   :  { %369 = vsyncpa [#allocation6], 1 }
 0x2dc   :  { %370 = vsyncpa [#allocation4], 1 }

// kernel: tpu_custom_call.1
= control target key start
LH: loop header
LB: loop body
LE: loop exit
PB: predicated region body
PF: predicated region fallthrough
CT: control target
= control target key end

     0   :  { %7 = vsyncpa [#allocation3], 0  ;;  %s581_s0 = inlined_call_operand.hbm [shape: f32[8,128], index: 0, kind: input, shape index: {}]   ;;  %s582_s1 = inlined_call_operand.hbm [shape: f32[3,32,256], index: 1, kind: input, shape index: {}]   ;;  %s583_s2 = inlined_call_operand.hbm [shape: f32[4,128], index: 2, kind: output, shape index: {}]  }
   0x1   :  { %8 = vsyncpa [#allocation6], 0 }
   0x2   :  { %9 = vsyncpa [#allocation4], 0  ;;  %s508_s9 = smov [#allocation2]   ;;  %s509_s11 = smov [#allocation5]  }
   0x3   :  { %s16_s10 = sshll.u32 %s508_s9, 4  ;;  %s25_s12 = sshll.u32 %s509_s11, 4  ;;  %s17_s10 = int_to_ptr.vmem [resolvable:$true] %s16_s10  ;;  %s532_s12 = int_to_ptr.vmem [resolvable:$true] %s25_s12 }
   0x4   :  { %s436_s15 = scalar_lea.hbm %s581_s0, 128 }
   0x5   :  { %p437_p0 = scmp.ne.s32.totalorder %s581_s0, %s436_s15  ;;  %p440_p1 = scmp.lt.u32.totalorder %s436_s15, %s581_s0 }
   0x7   :  { %p442_p2 = pnand %p440_p1, %p437_p0 }
   0x9   :  { %445 = shalt.err (!%p442_p2)
}
   0xa   :  { %s446_s20 = scalar_lea.vmem %s17_s10, 128  ;;  %p451_p4 = scmp.lt.s32.totalorder %s17_s10, %s17_s10 }
   0xb   :  { %p447_p3 = scmp.ne.s32.totalorder %s17_s10, %s446_s20  ;;  %p452_p5 = scmp.lt.s32.totalorder %s446_s20, %s446_s20 }
   0xd   :  { %p453_p6 = por %p452_p5, %p451_p4 }
   0xf   :  { %p454_p7 = pnand %p453_p6, %p447_p3 }
  0x11   :  { %457 = shalt.err (!%p454_p7)
}
  0x12   :  { %19 = dma.hbm_to_vmem [thread:$0]  %s581_s0, 128, %s17_s10, [#allocation3]  }
  0x13   :  { %s458_s25 = scalar_lea.hbm %s582_s1, 3072 }
  0x14   :  { %p459_p8 = scmp.ne.s32.totalorder %s582_s1, %s458_s25  ;;  %p462_p9 = scmp.lt.u32.totalorder %s458_s25, %s582_s1 }
  0x16   :  { %p464_p10 = pnand %p462_p9, %p459_p8 }
  0x18   :  { %467 = shalt.err (!%p464_p10)
}
  0x19   :  { %s468_s30 = scalar_lea.vmem %s532_s12, 3072  ;;  %p473_p12 = scmp.lt.s32.totalorder %s532_s12, %s532_s12 }
  0x1a   :  { %p469_p11 = scmp.ne.s32.totalorder %s532_s12, %s468_s30  ;;  %p474_p13 = scmp.lt.s32.totalorder %s468_s30, %s468_s30 }
  0x1c   :  { %p475_p0 = por %p474_p13, %p473_p12 }
  0x1e   :  { %p476_p1 = pnand %p475_p0, %p469_p11 }
  0x20   :  { %479 = shalt.err (!%p476_p1)
}
  0x21   :  { %s510_s0 = smov 256   ;;  %s511_s3 = smov 16  }
  0x22   :  { %31 = dma.hbm_to_vmem [thread:$0]  %s582_s1, 3072, %s532_s12, [#allocation6], %s510_s0, %s510_s0, %s511_s3  }
  0x23   :  { %502 = dma.done.wait [#allocation3], 128  }
  0x24   :  { %503 = vsyncadd [#allocation3], 4294967168 }
  0x25   :  { %504 = dma.done.wait [#allocation6], 3072  }
  0x26   :  { %505 = vsyncadd [#allocation6], 4294964224  ;;  %v512_v0 = vmov 0   ;;  %vm75_vm0 = vcmask 64512   ;;  %v38_v1 = vld [vmem:[#allocation2] sm:$0xff]  ;;  %v39_v2 = vld [vmem:[#allocation5] sm:$0xff] }
  0x27   :  { %434 = vset.pattern.permute.xlu0 %v512_v0  ;;  %435 = vset.pattern.permute.xlu1 %v512_v0  ;;  %v41_v3 = vld [vmem:[#allocation5 + $0x10] sm:$0xff]  ;;  %v43_v4 = vld [vmem:[#allocation5 + $0x20] sm:$0xff]  ;;  %v40_v5 = vld [vmem:[#allocation5 + $0x8] sm:$0xff]  ;;  %vm187_vm1 = vcmask 261120   ;;  %v513_v33 = vmov 0.0|0.0   ;;  %vm514_vm2 = vmmov 0  }
  0x28   :  { %388 = vmatprep.subr.mxu0 %v38_v1  ;;  %390 = vmatprep.mubr.msk.f32.mxu0 %vm75_vm0, %v39_v2  ;;  %v44_v6 = vld [vmem:[#allocation5 + $0x28] sm:$0xff]  ;;  %v42_v7 = vld [vmem:[#allocation5 + $0x18] sm:$0xff]  ;;  %v45_v8 = vld [vmem:[#allocation5 + $0x30] sm:$0xff]  ;;  %v515_v34 = vmov 0.0   ;;  %vm276_vm3 = vcmask 130048   ;;  %s516_s1 = smov [#allocation7]  }
  0x29   :  { %389 = vmatpush3.msra.mxu0 %v38_v1  ;;  %57 = vperm.xlu0 %434, %v40_v5   ;;  %v46_v9 = vld [vmem:[#allocation5 + $0x38] sm:$0xff]  ;;  %v49_v10 = vld [vmem:[#allocation5 + $0x48] sm:$0xff]  ;;  %v48_v13 = vld [vmem:[#allocation5 + $0x40] sm:$0xff]  ;;  %s357_s6 = sshll.u32 %s516_s1, 4  ;;  %s358_s6 = int_to_ptr.vmem [resolvable:$true] %s357_s6 }
  0x2a   :  { %391 = vmatmul.mubr.msk.f32.vlgmr.msra.gmra.mrb[0].mxu0 %vm75_vm0, %v41_v3  ;;  %67 = vperm.xlu1 %435, %v44_v6   ;;  %v51_v11 = vld [vmem:[#allocation5 + $0x58] sm:$0xff]  ;;  %v54_v12 = vld [vmem:[#allocation5 + $0x88] sm:$0xff]  ;;  %v50_v32 = vld [vmem:[#allocation5 + $0x50] sm:$0xff]  ;;  %s480_s7 = scalar_lea.vmem %s358_s6, 64  ;;  %p485_p3 = scmp.lt.s32.totalorder %s358_s6, %s358_s6 }
  0x2b   :  { %393 = vmatprep.mubr.msk.f32.mxu0 %vm75_vm0, %v43_v4  ;;  %404 = vmatprep.mubr.msk.f32.mxu1 %vm187_vm1, %v48_v13  ;;  %v53_v44 = vld [vmem:[#allocation5 + $0x80] sm:$0xff]  ;;  %p481_p2 = scmp.ne.s32.totalorder %s358_s6, %s480_s7  ;;  %p486_p4 = scmp.lt.s32.totalorder %s480_s7, %s480_s7 }
  0x2c   :  { %422 = vmatprep.subr.bf16.mxu0 %v513_v33 }
  0x2d   :  { %62 = vperm.xlu0 %434, %v42_v7   ;;  %p487_p5 = por %p486_p4, %p485_p3 }
  0x2e   :  { %394 = vmatmul.mubr.msk.f32.gmra.mrb[2].mxu0 %vm75_vm0, %v45_v8  ;;  %72 = vperm.xlu1 %435, %v46_v9  }
  0x2f   :  { %411 = vmatprep.mubr.msk.f32.mxu0 %vm514_vm2, %v515_v34  ;;  %p488_p6 = pnand %p487_p5, %p481_p2 }
  0x31   :  { %179 = vperm.xlu0 %434, %v49_v10  }
  0x32   :  { %184 = vperm.xlu1 %435, %v51_v11  }
  0x35   :  { %273 = vperm.xlu0 %434, %v54_v12  }
  0xa8   :  { %v58_v14 = vpop.permute.xlu0 %57 }
  0xa9   :  { %v68_v15 = vpop.permute.xlu1 %67 }
  0xac   :  { %v63_v16 = vpop.permute.xlu0 %62 }
  0xad   :  { %v73_v22 = vpop.permute.xlu1 %72 }
  0xb0   :  { %v180_v37 = vpop.permute.xlu0 %179 }
  0xb1   :  { %v185_v35 = vpop.permute.xlu1 %184 }
  0xb4   :  { %v274_v45 = vpop.permute.xlu0 %273 }
  0xfd   :  { %v392_v17 = vpop.f32.mrb[0].mxu0 }
  0xfe   :  { %v160_v18 = vadd.f32 %v392_v17, %v63_v16  ;;  %v154_v19 = vpop.f32.mrb[1].mxu0 }
  0xff   :  { %v155_v20 = vadd.f32 %v154_v19, %v58_v14 }
 0x100   :  { %v174_v21 = vmax.f32 %v160_v18, 0.0 }
 0x101   :  { %v173_v23 = vmax.f32 %v155_v20, 0.0  ;;  %v395_v24 = vpop.f32.mrb[2].mxu0 }
 0x102   :  { %v170_v25 = vadd.f32 %v395_v24, %v73_v22  ;;  %v164_v26 = vpop.f32.mrb[3].mxu0 }
 0x103   :  { %v165_v27 = vadd.f32 %v164_v26, %v68_v15  ;;  %v414_v28 = vpack.c.bf16 %v174_v21, %v173_v23 }
 0x104   :  { %v176_v29 = vmax.f32 %v170_v25, 0.0 }
 0x105   :  { %v175_v30 = vmax.f32 %v165_v27, 0.0  ;;  %415 = vmatprep.subr.bf16.mxu1 %v414_v28 }
 0x106   :  { %417 = vmatpush3.bf16.msra.mxu1 %v414_v28 }
 0x107   :  { %v418_v31 = vpack.c.bf16 %v176_v29, %v175_v30 }
 0x109   :  { %419 = vmatprep.subr.bf16.mxu1 %v418_v31 }
 0x10a   :  { %421 = vmatpush3.bf16.msra.mxu1 %v418_v31 }
 0x10d   :  { %405 = vmatmul.mubr.msk.f32.vlgmr.msra.gmra.mrb[0].mxu1 %vm187_vm1, %v50_v32 }
 0x1e0   :  { %v406_v36 = vpop.f32.mrb[0].mxu1 }
 0x1e1   :  { %v266_v38 = vadd.f32 %v406_v36, %v185_v35  ;;  %v260_v39 = vpop.f32.mrb[1].mxu1 }
 0x1e2   :  { %v261_v40 = vadd.f32 %v260_v39, %v180_v37 }
 0x1e3   :  { %v270_v41 = vmax.f32 %v266_v38, 0.0 }
 0x1e4   :  { %v269_v42 = vmax.f32 %v261_v40, 0.0 }
 0x1e6   :  { %v423_v43 = vpack.c.bf16 %v270_v41, %v269_v42 }
 0x1e8   :  { %424 = vmatpush3.bf16.msra.mxu0 %v423_v43 }
 0x1eb   :  { %412 = vmatmul.mubr.msk.f32.vlgmr.msra.gmra.mrb[4].mxu0 %vm276_vm3, %v53_v44 }
 0x2be   :  { %v346_v46 = vpop.f32.mrb[4].mxu0 }
 0x2bf   :  { %v347_v47 = vadd.f32 %v346_v46, %v274_v45  ;;  %v413_v48 = vpop.f32.mrb[5].mxu0 }
 0x2c1   :  { %350 = vst [vmem:[#allocation7] sm:$0xf] %v347_v47 }
 0x2c2   :  { %491 = shalt.err (!%p488_p6)
}
 0x2c3   :  { %s492_s10 = scalar_lea.hbm %s583_s2, 64 }
 0x2c4   :  { %p493_p7 = scmp.ne.s32.totalorder %s583_s2, %s492_s10  ;;  %p496_p8 = scmp.lt.u32.totalorder %s492_s10, %s583_s2 }
 0x2c6   :  { %p498_p9 = pnand %p496_p8, %p493_p7 }
 0x2c8   :  { %501 = shalt.err (!%p498_p9)
}
 0x2c9   :  { %360 = dma.vmem_to_hbm [thread:$0]  %s358_s6, 64, %s583_s2, [#allocation4]  }
 0x2ca   :  { %506 = dma.done.wait [#allocation4], 64  }
 0x2cb   :  { %507 = vsyncadd [#allocation4], 4294967232 }
 0x2cc   :  { %364 = vsyncpa [#allocation3], 1 }
 0x2cd   :  { %365 = vsyncpa [#allocation6], 1 }
 0x2ce   :  { %366 = vsyncpa [#allocation4], 1 }

</bundles_post_ra>
